<compile_context>
chip_gen: v5e
topology: v5e:2x2
jax: 0.10.0
libtpu: 0.0.40
codegen_flags: <defaults>
</compile_context>

<pallas_src>
import math
import jax
import jax.numpy as jnp
from jax.experimental import pallas as pl
from jax.experimental.pallas import tpu as pltpu


# ------------------------- helpers -------------------------------------------

def _round_up(x, m):
    return ((x + m - 1) // m) * m


def _pad2d(a, rows, cols):
    pr, pc = rows - a.shape[0], cols - a.shape[1]
    if pr or pc:
        a = jnp.pad(a, ((0, pr), (0, pc)))
    return a


# ------------------------- Pallas kernels -----------------------------------

def _fc_kernel(x_ref, w_ref, m_ref, b_ref, o_ref, acc_ref):
    # x: [TM, TK] bf16, w: [TK, TN] bf16, m: [TM, 1] f32 mask, b: [1, TN] f32
    # o: [TM, TN] f32, acc: [TM, TN] f32 scratch (persists across K steps)
    k = pl.program_id(2)

    @pl.when(k == 0)
    def _():
        acc_ref[...] = jnp.zeros_like(acc_ref)

    # Mask gate fused into the matmul (VPU filler under MXU-bound compute).
    x = x_ref[...] * m_ref[...].astype(jnp.bfloat16)
    acc_ref[...] += jnp.dot(x, w_ref[...], preferred_element_type=jnp.float32)

    @pl.when(k == pl.num_programs(2) - 1)
    def _():
        o_ref[...] = (acc_ref[...] + b_ref[...]).astype(o_ref.dtype)


def _make_pos_emb_kernel(hidden_size):
    neg_log = -math.log(10000.0)

    def kernel(o_ref):
        # Standard sinusoidal PE on a lane-dense [S_pad, H_pad] tile.
        # pe[p, 2i] = sin(p / 10000^(2i/H)); pe[p, 2i+1] = cos(...)
        S, Hp = o_ref.shape
        dim = jax.lax.broadcasted_iota(jnp.int32, (1, Hp), 1)          # [1, Hp]
        half2 = (2 * (dim // 2)).astype(jnp.float32)
        # exp() only over the [1, Hp] row -> EUP work is H, not S*H.
        inv_freq = jnp.exp(half2 * (neg_log / float(hidden_size)))     # [1, Hp]
        pos = jax.lax.broadcasted_iota(jnp.float32, (S, Hp), 0)        # [S, Hp]
        angle = pos * inv_freq
        o_ref[...] = jnp.where(dim % 2 == 0, jnp.sin(angle), jnp.cos(angle))

    return kernel


# ------------------------- wrappers ------------------------------------------

def fc_pallas(x_bsd, mask_bs, weight, bias, *, tm=256, tn=256, tk=256):
    """(mask-gated) Linear over last dim: [B,S,Dt] @ [Dt,H] + [H] -> [B,S,H]."""
    B, S, Dt = x_bsd.shape
    H = weight.shape[1]
    M = B * S

    # bf16 feeds the MXU at full rate on v5e/v6e/v7x; accumulate in f32.
    x2d = x_bsd.reshape(M, Dt).astype(jnp.bfloat16)
    w2d = weight.astype(jnp.bfloat16)
    m2d = mask_bs.reshape(M, 1).astype(jnp.float32)
    b2d = bias.reshape(1, H).astype(jnp.float32)

    # Shrink tiles for small shapes while keeping (sublane, lane) alignment.
    tm = min(tm, _round_up(M, 16))     # 16 = bf16 sublane pack
    tn = min(tn, _round_up(H, 128))    # lane-dense output stores
    tk = min(tk, _round_up(Dt, 128))
    Mp, Np, Kp = _round_up(M, tm), _round_up(H, tn), _round_up(Dt, tk)

    x2d = _pad2d(x2d, Mp, Kp)
    w2d = _pad2d(w2d, Kp, Np)
    m2d = _pad2d(m2d, Mp, 1)
    b2d = _pad2d(b2d, 1, Np)

    grid = (Mp // tm, Np // tn, Kp // tk)   # K (reduction) last

    out = pl.pallas_call(
        _fc_kernel,
        out_shape=jax.ShapeDtypeStruct((Mp, Np), jnp.float32),
        grid_spec=pltpu.PrefetchScalarGridSpec(
            num_scalar_prefetch=0,
            grid=grid,
            in_specs=[
                pl.BlockSpec((tm, tk), lambda i, j, k: (i, k)),   # x
                pl.BlockSpec((tk, tn), lambda i, j, k: (k, j)),   # w
                pl.BlockSpec((tm, 1), lambda i, j, k: (i, 0)),    # mask
                pl.BlockSpec((1, tn), lambda i, j, k: (0, j)),    # bias
            ],
            out_specs=pl.BlockSpec((tm, tn), lambda i, j, k: (i, j)),
            scratch_shapes=[pltpu.VMEM((tm, tn), jnp.float32)],
        ),
        compiler_params=pltpu.CompilerParams(
            dimension_semantics=("parallel", "parallel", "arbitrary")),
    )(x2d, w2d, m2d, b2d)

    return out[:M, :H].reshape(B, S, H)


def pos_emb_pallas(S, H):
    """Sinusoidal positional embedding table, returned as [1, S, H].

    Input-independent; returned broadcastable (no [B,S,H] HBM materialization).
    """
    Sp = _round_up(S, 8)
    Hp = _round_up(H, 128)   # lane-dense stores inside the kernel
    pe = pl.pallas_call(
        _make_pos_emb_kernel(H),
        out_shape=jax.ShapeDtypeStruct((Sp, Hp), jnp.float32),
    )()
    return pe[:S, :H][None]   # [1, S, H]


# ------------------------- SequenceEncoder forward ---------------------------

def make_params(key, vocab_size, n_types, d_text, d_hidden):
    k0, k1, k2, k3 = jax.random.split(key, 4)
    return {
        # stand-in text encoder params (glue)
        "tok_emb": jax.random.normal(k0, (vocab_size, d_text), jnp.float32) * 0.02,
        "type_emb": jax.random.normal(k1, (n_types, d_text), jnp.float32) * 0.02,
        # fc = nn.Linear(text_hidden, hidden_size, bias=True)
        "fc_w": jax.random.normal(k2, (d_text, d_hidden), jnp.float32)
                / math.sqrt(d_text),
        "fc_b": jax.random.normal(k3, (d_hidden,), jnp.float32) * 0.01,
    }


def text_encoder_stub(params, input_ids, token_type_ids):
    # Deterministic stand-in for PretrainedTextEncoder: embedding lookup.
    # Mask gating is fused into the FC kernel instead of a separate HBM pass.
    h = params["tok_emb"][input_ids] + params["type_emb"][token_type_ids]
    return {"last_hidden_state": h}


def sequence_encoder_forward(params, input_ids, attention_mask, token_type_ids,
                             hidden_size):
    encoder_out = text_encoder_stub(params, input_ids, token_type_ids)
    sequence_states = encoder_out["last_hidden_state"]        # [B, S, D_text]
    # only_firstpos == False, no_fc_after_text_encoder == False, nopos == False
    sequence_states = fc_pallas(sequence_states, attention_mask,
                                params["fc_w"], params["fc_b"])
    _, S, _ = sequence_states.shape
    pos_embed = pos_emb_pallas(S, hidden_size)                # [1, S, H]
    return {**encoder_out,
            "sequence_states": sequence_states,
            "pos_embed": pos_embed}


# ------------------------- main ----------------------------------------------

if __name__ == "__main__":
    B, S = 2, 8
    VOCAB, N_TYPES = 64, 2
    D_TEXT = 64          # text_encoder.hidden_size
    HIDDEN = 32          # cfg.model.encoder_embed_dim

    key = jax.random.PRNGKey(0)
    kp, ki, km, kt = jax.random.split(key, 4)

    params = make_params(kp, VOCAB, N_TYPES, D_TEXT, HIDDEN)
    input_ids = jax.random.randint(ki, (B, S), 0, VOCAB, dtype=jnp.int32)
    attention_mask = jnp.ones((B, S), dtype=jnp.int32)
    token_type_ids = jnp.zeros((B, S), dtype=jnp.int32)

    out = sequence_encoder_forward(params, input_ids, attention_mask,
                                   token_type_ids, HIDDEN)
    jax.block_until_ready(out["sequence_states"])
    jax.block_until_ready(out["pos_embed"])

    # sanity check against plain-JAX reference (same bf16 MXU inputs)
    h = out["last_hidden_state"]
    x_bf = (h * attention_mask[..., None].astype(h.dtype)
            ).astype(jnp.bfloat16).reshape(B * S, D_TEXT)
    w_bf = params["fc_w"].astype(jnp.bfloat16)
    ref_states = (jnp.dot(x_bf, w_bf, preferred_element_type=jnp.float32)
                  + params["fc_b"]).reshape(B, S, HIDDEN)
    assert jnp.allclose(out["sequence_states"], ref_states, atol=1e-3), \
        float(jnp.max(jnp.abs(out["sequence_states"] - ref_states)))

    pos = jnp.arange(S, dtype=jnp.float32)[:, None]
    i2 = 2.0 * (jnp.arange(HIDDEN) // 2).astype(jnp.float32)
    ang = pos * jnp.exp(-math.log(10000.0) * i2 / HIDDEN)
    ref_pe = jnp.where(jnp.arange(HIDDEN) % 2 == 0, jnp.sin(ang), jnp.cos(ang))
    assert jnp.allclose(out["pos_embed"][0], ref_pe, atol=1e-5)

    print("KERNEL_OK")
</pallas_src>

<mosaic_0001>
module attributes {stable_mosaic.version = 11 : i64} {
  func.func @_fc_kernel(%arg0: i32, %arg1: i32, %arg2: i32, %arg3: memref<16x128xbf16, #tpu.memory_space<vmem>>, %arg4: memref<128x128xbf16, #tpu.memory_space<vmem>>, %arg5: memref<16x1xf32, #tpu.memory_space<vmem>>, %arg6: memref<1x128xf32, #tpu.memory_space<vmem>>, %arg7: memref<16x128xf32, #tpu.memory_space<vmem>>, %arg8: memref<16x128xf32, #tpu.memory_space<vmem>>) attributes {dimension_semantics = [#tpu.dimension_semantics<parallel>, #tpu.dimension_semantics<parallel>, #tpu.dimension_semantics<arbitrary>], iteration_bounds = array<i64: 1, 1, 1>, scalar_prefetch = 0 : i64, scratch_operands = 1 : i64, tpu.core_type = #tpu.core_type<tc>, window_params = [{transform_indices = @transform_0, window_bounds = array<i64: 16, 128>}, {transform_indices = @transform_1, window_bounds = array<i64: 128, 128>}, {transform_indices = @transform_2, window_bounds = array<i64: 16, 1>}, {transform_indices = @transform_3, window_bounds = array<i64: 1, 128>}, {transform_indices = @transform_4, window_bounds = array<i64: 16, 128>}]} {
    %c0_i32 = arith.constant 0 : i32
    %0 = arith.cmpi eq, %arg2, %c0_i32 : i32
    %1 = arith.extui %0 : i1 to i32
    %c0_i32_0 = arith.constant 0 : i32
    %2 = arith.cmpi ne, %1, %c0_i32_0 : i32
    scf.if %2 {
      %cst_12 = arith.constant 0.000000e+00 : f32
      %16 = vector.broadcast %cst_12 : f32 to vector<16x128xf32>
      %c0_13 = arith.constant 0 : index
      %c0_14 = arith.constant 0 : index
      %17 = vector.load %arg8[%c0_13, %c0_14] : memref<16x128xf32, #tpu.memory_space<vmem>>, vector<16x128xf32>
      tpu.vector_store %arg8[%c0_13, %c0_14], %16 {strides = array<i32>} : memref<16x128xf32, #tpu.memory_space<vmem>>, vector<16x128xf32>,
    } else {
    }
    %c0 = arith.constant 0 : index
    %c0_1 = arith.constant 0 : index
    %3 = vector.load %arg3[%c0, %c0_1] : memref<16x128xbf16, #tpu.memory_space<vmem>>, vector<16x128xbf16>
    %c0_2 = arith.constant 0 : index
    %c0_3 = arith.constant 0 : index
    %4 = vector.load %arg5[%c0_2, %c0_3] : memref<16x1xf32, #tpu.memory_space<vmem>>, vector<16x1xf32>
    %5 = arith.truncf %4 : vector<16x1xf32> to vector<16x1xbf16>
    %6 = vector.broadcast %5 : vector<16x1xbf16> to vector<16x128xbf16>
    %7 = arith.mulf %3, %6 : vector<16x128xbf16>
    %c0_4 = arith.constant 0 : index
    %c0_5 = arith.constant 0 : index
    %8 = vector.load %arg8[%c0_4, %c0_5] : memref<16x128xf32, #tpu.memory_space<vmem>>, vector<16x128xf32>
    %c0_6 = arith.constant 0 : index
    %c0_7 = arith.constant 0 : index
    %9 = vector.load %arg4[%c0_6, %c0_7] : memref<128x128xbf16, #tpu.memory_space<vmem>>, vector<128x128xbf16>
    %cst = arith.constant dense<0.000000e+00> : vector<16x128xf32>
    %10 = tpu.matmul %7, %9, %cst {dimension_numbers = #tpu.dot_dimension_numbers<[1], [0], [0], [1], [0, 0, 1, 1], [], []>} : vector<16x128xbf16>, vector<128x128xbf16>, vector<16x128xf32> -> vector<16x128xf32>
    %11 = arith.addf %8, %10 : vector<16x128xf32>
    %c0_8 = arith.constant 0 : index
    %c0_9 = arith.constant 0 : index
    %12 = vector.load %arg8[%c0_8, %c0_9] : memref<16x128xf32, #tpu.memory_space<vmem>>, vector<16x128xf32>
    tpu.vector_store %arg8[%c0_8, %c0_9], %11 {strides = array<i32>} : memref<16x128xf32, #tpu.memory_space<vmem>>, vector<16x128xf32>,
    %c0_i32_10 = arith.constant 0 : i32
    %13 = arith.cmpi eq, %arg2, %c0_i32_10 : i32
    %14 = arith.extui %13 : i1 to i32
    %c0_i32_11 = arith.constant 0 : i32
    %15 = arith.cmpi ne, %14, %c0_i32_11 : i32
    scf.if %15 {
      %c0_12 = arith.constant 0 : index
      %c0_13 = arith.constant 0 : index
      %16 = vector.load %arg8[%c0_12, %c0_13] : memref<16x128xf32, #tpu.memory_space<vmem>>, vector<16x128xf32>
      %c0_14 = arith.constant 0 : index
      %c0_15 = arith.constant 0 : index
      %17 = vector.load %arg6[%c0_14, %c0_15] : memref<1x128xf32, #tpu.memory_space<vmem>>, vector<1x128xf32>
      %18 = vector.broadcast %17 : vector<1x128xf32> to vector<16x128xf32>
      %19 = arith.addf %16, %18 : vector<16x128xf32>
      %c0_16 = arith.constant 0 : index
      %c0_17 = arith.constant 0 : index
      %20 = vector.load %arg7[%c0_16, %c0_17] : memref<16x128xf32, #tpu.memory_space<vmem>>, vector<16x128xf32>
      tpu.vector_store %arg7[%c0_16, %c0_17], %19 {strides = array<i32>} : memref<16x128xf32, #tpu.memory_space<vmem>>, vector<16x128xf32>,
    } else {
    }
    return
  }
  func.func @transform_0(%arg0: i32, %arg1: i32, %arg2: i32) -> (i32, i32) {
    %c0_i32 = arith.constant 0 : i32
    return %arg0, %arg2 : i32, i32
  }
  func.func @transform_1(%arg0: i32, %arg1: i32, %arg2: i32) -> (i32, i32) {
    %c0_i32 = arith.constant 0 : i32
    return %arg2, %arg1 : i32, i32
  }
  func.func @transform_2(%arg0: i32, %arg1: i32, %arg2: i32) -> (i32, i32) {
    %c0_i32 = arith.constant 0 : i32
    %c0_i32_0 = arith.constant 0 : i32
    return %arg0, %c0_i32 : i32, i32
  }
  func.func @transform_3(%arg0: i32, %arg1: i32, %arg2: i32) -> (i32, i32) {
    %c0_i32 = arith.constant 0 : i32
    %c0_i32_0 = arith.constant 0 : i32
    return %c0_i32, %arg1 : i32, i32
  }
  func.func @transform_4(%arg0: i32, %arg1: i32, %arg2: i32) -> (i32, i32) {
    %c0_i32 = arith.constant 0 : i32
    return %arg0, %arg1 : i32, i32
  }
}

</mosaic_0001>

<bundles_post_ra>
// kernel: tpu_custom_call.1
= control target key start
LH: loop header
LB: loop body
LE: loop exit
PB: predicated region body
PF: predicated region fallthrough
CT: control target
= control target key end

     0   :  { %9 = vsyncpa [#allocation4], 0  ;;  %s344_s0 = inlined_call_operand.vmem [shape: bf16[16,128], index: 0, kind: input, shape index: {}]   ;;  %s345_s1 = inlined_call_operand.hbm [shape: bf16[128,128], index: 1, kind: input, shape index: {}]   ;;  %s346_s2 = inlined_call_operand.vmem [shape: f32[16,1], index: 2, kind: input, shape index: {}]   ;;  %s347_s3 = inlined_call_operand.vmem [shape: f32[1,128], index: 3, kind: input, shape index: {}]   ;;  %s348_s4 = inlined_call_operand.hbm [shape: f32[16,128], index: 4, kind: output, shape index: {}]  }
   0x1   :  { %10 = vsyncpa [#allocation5], 0  ;;  %s17_s17 = sshll.u32 %s345_s1, 4  ;;  %s293_s18 = smov [#allocation3]   ;;  %s18_s17 = int_to_ptr.hbm [resolvable:$true] %s17_s17 }
   0x2   :  { %s19_s19 = sshll.u32 %s293_s18, 4  ;;  %s294_s20 = smov 64   ;;  %s20_s19 = int_to_ptr.vmem [resolvable:$true] %s19_s19 }
   0x3   :  { %s295_s21 = smov 4  }
   0x4   :  { %25 = dma.hbm_to_vmem [thread:$0]  %s18_s17, 1024, %s20_s19, [#allocation4], %s294_s20, %s294_s20, %s295_s21  }
   0x5   :  { %289 = dma.done.wait [#allocation4], 1024  }
   0x6   :  { %290 = vsyncadd [#allocation4], 4294966272  ;;  %v296_v0 = vmov 0   ;;  %v42_v1 = vld [vmem:[%s346_s2] sm:$0xff]  ;;  %v226_v2 = vld [vmem:[#allocation3 + $0x38] sm:$0xff]  ;;  %s298_s28 = smov [#allocation6]  }
   0x7   :  { %239 = vset.pattern.permute.xlu0 %v296_v0  ;;  %v44_v3 = vpack.c.bf16 %v42_v1, %v42_v1  ;;  %137 = vmatpush.bf16.msra.mxu0 %v226_v2  ;;  %v225_v4 = vld [vmem:[#allocation3 + $0x30] sm:$0xff]  ;;  %v43_v5 = vld [vmem:[%s346_s2 + $0x8] sm:$0xff]  ;;  %v223_v8 = vld [vmem:[#allocation3 + $0x20] sm:$0xff]  ;;  %v297_v13 = vmov 839922192   ;;  %s172_s29 = sshll.u32 %s298_s28, 4  ;;  %s173_s29 = int_to_ptr.vmem [resolvable:$true] %s172_s29 }
   0x8   :  { %v224_v6 = vld [vmem:[#allocation3 + $0x28] sm:$0xff]  ;;  %v45_v7 = vpack.c.bf16 %v43_v5, %v43_v5  ;;  %v222_v9 = vld [vmem:[#allocation3 + $0x18] sm:$0xff]  ;;  %v221_v10 = vld [vmem:[#allocation3 + $0x10] sm:$0xff]  ;;  %v52_v14 = vunpack.c.l.s4 %v297_v13  ;;  %s174_s5 = sshll.u32 %s348_s4, 4  ;;  %s299_s6 = smov 128   ;;  %s175_s5 = int_to_ptr.hbm [resolvable:$true] %s174_s5 }
   0x9   :  { %48 = vperm.xlu0 %239, %v44_v3   ;;  %v220_v11 = vld [vmem:[#allocation3 + $0x8] sm:$0xff]  ;;  %v219_v12 = vld [vmem:[#allocation3] sm:$0xff]  ;;  %s300_s7 = smov 8  }
   0xa   :  { %v53_v16 = vunpack.c.0.s8 %v52_v14  ;;  %v228_v18 = vld [vmem:[%s344_s0] sm:$0xff]  }
   0xb   :  { %138 = vmatpush.bf16.msra.mxu0 %v225_v4  ;;  %v229_v20 = vunpack.c.l.bf16 %v228_v18  ;;  %v230_v22 = vunpack.c.h.bf16 %v228_v18  ;;  %v240_v28 = vld [vmem:[%s347_s3] ss:$0 sm:$0xff] }
   0xf   :  { %139 = vmatpush.bf16.msra.mxu0 %v224_v6 }
  0x11   :  { %57 = vperm.xlu0 %239, %v45_v7  }
  0x13   :  { %140 = vmatpush.bf16.msra.mxu0 %v223_v8 }
  0x17   :  { %141 = vmatpush.bf16.msra.mxu0 %v222_v9 }
  0x1b   :  { %142 = vmatpush.bf16.msra.mxu0 %v221_v10 }
  0x1f   :  { %143 = vmatpush.bf16.msra.mxu0 %v220_v11 }
  0x23   :  { %144 = vmatpush.bf16.msra.mxu0 %v219_v12 }
  0x7b   :  { %v49_v15 = vpop.permute.xlu0 %48 }
  0x7c   :  { %v54_v17 = vperm.slane %v49_v15, %v53_v16 }
  0x7e   :  { %v66_v21 = vunpack.c.l.bf16 %v54_v17 }
  0x80   :  { %v68_v25 = vmul.f32 %v229_v20, %v66_v21 }
  0x83   :  { %v58_v19 = vpop.permute.xlu0 %57 }
  0x84   :  { %v63_v23 = vperm.slane %v58_v19, %v53_v16 }
  0x86   :  { %v67_v24 = vunpack.c.l.bf16 %v63_v23 }
  0x88   :  { %v69_v26 = vmul.f32 %v230_v22, %v67_v24 }
  0x8a   :  { %v70_v27 = vpack.c.bf16 %v69_v26, %v68_v25 }
  0x8c   :  { %145 = vmatmul.bf16.vlgmr.msra.gmra.mxu0 %v70_v27 }
 0x109   :  { %v146_v29 = vpop.f32.mrf.mxu0 }
 0x10a   :  { %v164_v30 = vadd.f32 %v240_v28, %v146_v29 }
 0x10c   :  { %166 = vst [vmem:[#allocation6] sm:$0xff] %v164_v30 }
 0x111   :  { %v148_v31 = vpop.f32.mrf.mxu0 }
 0x112   :  { %v165_v32 = vadd.f32 %v240_v28, %v148_v31 }
 0x114   :  { %167 = vst [vmem:[#allocation6 + $0x8] sm:$0xff] %v165_v32 }
 0x115   :  { %180 = dma.vmem_to_hbm [thread:$0]  %s173_s29, 256, %s175_s5, [#allocation5], %s299_s6, %s299_s6, %s300_s7  }
 0x116   :  { %291 = dma.done.wait [#allocation5], 256  }
 0x117   :  { %292 = vsyncadd [#allocation5], 4294967040 }
 0x118   :  { %185 = vsyncpa [#allocation4], 1 }
 0x119   :  { %186 = vsyncpa [#allocation5], 1 }

</bundles_post_ra>
